<compile_context>
chip_gen: v7x
topology: tpu7x:2x2x1
jax: 0.10.0
libtpu: 0.0.40
codegen_flags: <defaults>
</compile_context>

<pallas_src>
import functools

import jax
import jax.numpy as jnp
from jax import lax
from jax.experimental import pallas as pl
from jax.experimental.pallas import tpu as pltpu

# F.normalize(x, dim=1) == x * rsqrt(max(sum(x*x), eps^2)), eps = 1e-12.
_EPS2 = 1e-24


def _infonce_kernel(f1_ref, f2_ref, loss_ref, f1p_scr, m_sc, l_sc, diag_sc, *,
                    inv_temperature, mm_dtype, use_const_max, true_b,
                    bq_row, bq_col, col_mask):
    qi = pl.program_id(0)
    kj = pl.program_id(1)

    @pl.when(kj == 0)
    def _prep_row_block():
        # Once-per-row-block work (the f1 block is resident across kj): f32
        # cast, rsqrt-normalize, fold 1/temperature into the lhs scale, cast to
        # the matmul dtype and stash in VMEM scratch; the inner loop reuses it.
        f1 = f1_ref[...].astype(jnp.float32)
        inv1 = lax.rsqrt(jnp.maximum(jnp.sum(f1 * f1, axis=1, keepdims=True), _EPS2))
        f1p_scr[...] = (f1 * (inv1 * inv_temperature)).astype(mm_dtype)
        if not use_const_max:
            m_sc[...] = jnp.full(m_sc.shape, -jnp.inf, dtype=m_sc.dtype)
        l_sc[...] = jnp.zeros(l_sc.shape, dtype=l_sc.dtype)
        diag_sc[...] = jnp.zeros(diag_sc.shape, dtype=diag_sc.dtype)

    # Per-step: normalize the streamed f2 tile, then NT contraction on the MXU
    # (no explicit transpose), f32 accumulation.
    f2 = f2_ref[...].astype(jnp.float32)
    inv2 = lax.rsqrt(jnp.maximum(jnp.sum(f2 * f2, axis=1, keepdims=True), _EPS2))
    f2n = (f2 * inv2).astype(mm_dtype)

    sim = lax.dot_general(
        f1p_scr[...], f2n,
        dimension_numbers=(((1,), (1,)), ((), ())),
        preferred_element_type=jnp.float32)

    if col_mask:
        # Padded (zero) f2 rows must not contribute to the softmax denominator.
        col_ids = lax.broadcasted_iota(jnp.int32, sim.shape, 1) + kj * bq_col
        sim = jnp.where(col_ids < true_b, sim, -jnp.inf)

    if use_const_max:
        # Cosine sims are bounded by 1/temperature -> a constant max is exact
        # and drops the per-row max reduce + rescale.
        l_sc[...] = l_sc[...] + jnp.sum(
            jnp.exp(sim - inv_temperature), axis=1, keepdims=True)
    else:
        m_prev = m_sc[...]
        m_new = jnp.maximum(m_prev, jnp.max(sim, axis=1, keepdims=True))
        alpha = jnp.exp(m_prev - m_new)
        l_sc[...] = alpha * l_sc[...] + jnp.sum(
            jnp.exp(sim - m_new), axis=1, keepdims=True)
        m_sc[...] = m_new

    # Positive-pair logits (diagonal of the global sim matrix).  bq_row and
    # bq_col are multiples of one another, so the overlap between this row
    # block's global row range and this column block's global column range is
    # either empty or exactly L = min(bq_row, bq_col) rows at aligned offsets.
    L = min(bq_row, bq_col)
    r0 = qi * bq_row
    c0 = kj * bq_col
    lo = jnp.maximum(r0, c0)
    hi = jnp.minimum(r0 + bq_row, c0 + bq_col)

    @pl.when(lo < hi)
    def _diag():
        off1 = lo - r0                      # offset into the f1 / diag rows
        off2 = lo - c0                      # offset into the f2 rows
        a = f1_ref[pl.ds(off1, L), :].astype(jnp.float32)
        c = f2_ref[pl.ds(off2, L), :].astype(jnp.float32)
        inv_a = lax.rsqrt(jnp.maximum(jnp.sum(a * a, axis=1, keepdims=True), _EPS2))
        inv_c = lax.rsqrt(jnp.maximum(jnp.sum(c * c, axis=1, keepdims=True), _EPS2))
        diag_sc[pl.ds(off1, L), :] = (
            jnp.sum(a * c, axis=1, keepdims=True)
            * (inv_a * inv_c * inv_temperature))

    @pl.when(kj == pl.num_programs(1) - 1)
    def _finalize():
        if use_const_max:
            lse = inv_temperature + jnp.log(l_sc[...])
        else:
            lse = m_sc[...] + jnp.log(l_sc[...])
        loss_ref[...] = lse - diag_sc[...]


def _round_up(x, m):
    return (x + m - 1) // m * m


def _vmem_estimate(bq_row, bq_col, d, in_item, mm_item):
    """Rough per-core VMEM working set for one grid step."""
    est = 2 * bq_row * d * in_item           # f1 block (double-buffered)
    est += bq_row * d * (mm_item + 4)        # prepared-f1 scratch + f32 prep temp
    est += 2 * bq_col * d * in_item          # f2 block (double-buffered)
    est += bq_col * d * (8 + mm_item)        # f2 f32 copy + normalized + mm cast
    est += 4 * bq_row * bq_col * 4           # sim / exp / mask temporaries
    est += 16 * bq_row                       # accumulators + out block
    return est


def _choose_tiles(b, d, in_item, mm_item, usable_vmem, prefer_256_cols):
    """Pick (b_pad, bq_row, bq_col).

    Pad-and-mask tiling, MXU-aligned column tiles (256 on v6e/v7x, 128 on
    v5e), row tiles grown to fill the VMEM budget, >= 2 row blocks when it is
    cheap (keeps both v7x TensorCores busy on the parallel axis).
    """
    b_pad = _round_up(b, 8)
    if b_pad > 128:
        b_pad = _round_up(b, 128)
        bq_col = 256 if (prefer_256_cols and b_pad % 256 == 0) else 128
    else:
        bq_col = b_pad

    cands = {b_pad}
    x = 8
    while x <= bq_col:                       # divisors of the column tile
        if bq_col % x == 0 and b_pad % x == 0:
            cands.add(x)
        x += 8
    k = 1
    while k * bq_col <= b_pad:               # multiples of the column tile
        if b_pad % (k * bq_col) == 0:
            cands.add(k * bq_col)
        k += 1

    fitting = sorted(c for c in cands
                     if _vmem_estimate(c, bq_col, d, in_item, mm_item) <= usable_vmem)
    if not fitting:
        return b_pad, min(cands), bq_col     # extreme d; let the compiler try

    bq_row = fitting[-1]
    # Prefer >= 2 row blocks as long as it at most doubles the number of row
    # blocks (i.e. at most doubles the f2 re-stream / per-step overhead).
    split = [c for c in fitting if b_pad // c >= 2]
    if split and split[-1] * 2 >= bq_row:
        bq_row = split[-1]
    return b_pad, bq_row, bq_col


def infonce_loss(features1, features2, temperature=0.1, *, matmul_in_bf16=True):
    """InfoNCE loss. features1/features2: (batch, feature_dim)."""
    assert features1.shape == features2.shape and features1.ndim == 2
    b, d = features1.shape
    inv_t = 1.0 / float(temperature)
    # Constant-max fast path is exact (|cos| <= 1); keep it only while
    # exp(+-2/T) stays comfortably representable in f32.
    use_const_max = inv_t <= 30.0
    mm_dtype = jnp.bfloat16 if matmul_in_bf16 else jnp.float32

    # Stream bf16 tiles when the matmul runs in bf16: halves the dominant HBM
    # traffic (f2 is re-read once per row block) and the double-buffer VMEM.
    if matmul_in_bf16 and features1.dtype != jnp.bfloat16:
        features1 = features1.astype(jnp.bfloat16)
        features2 = features2.astype(jnp.bfloat16)

    in_item = jnp.dtype(features1.dtype).itemsize
    mm_item = jnp.dtype(mm_dtype).itemsize

    # Generation-aware VMEM budget (128 MiB on v5e/v6e, 64 MiB per core on v7x).
    try:
        cap = int(pltpu.get_tpu_info().vmem_capacity_bytes)
    except Exception:  # fall back to the most restrictive generation
        cap = 64 * 1024 * 1024
    usable = max(24 << 20, min(int(cap * 0.75), cap - (16 << 20)))

    try:
        kind = jax.devices()[0].device_kind.lower()
    except Exception:
        kind = ""
    prefer_256_cols = not any(t in kind for t in ("v5 lite", "v5lite", "v5e"))

    b_pad, bq_row, bq_col = _choose_tiles(b, d, in_item, mm_item, usable,
                                          prefer_256_cols)
    if b_pad != b:
        pad = ((0, b_pad - b), (0, 0))
        features1 = jnp.pad(features1, pad)
        features2 = jnp.pad(features2, pad)

    n_row = b_pad // bq_row
    n_col = b_pad // bq_col

    kernel = functools.partial(
        _infonce_kernel,
        inv_temperature=inv_t, mm_dtype=mm_dtype, use_const_max=use_const_max,
        true_b=b, bq_row=bq_row, bq_col=bq_col, col_mask=(b_pad != b))

    out = pl.pallas_call(
        kernel,
        out_shape=jax.ShapeDtypeStruct((b_pad, 1), jnp.float32),
        grid_spec=pltpu.PrefetchScalarGridSpec(
            num_scalar_prefetch=0,
            grid=(n_row, n_col),
            in_specs=[
                pl.BlockSpec((bq_row, d), lambda qi, kj: (qi, 0)),
                pl.BlockSpec((bq_col, d), lambda qi, kj: (kj, 0)),
            ],
            out_specs=pl.BlockSpec((bq_row, 1), lambda qi, kj: (qi, 0)),
            scratch_shapes=[
                pltpu.VMEM((bq_row, d), mm_dtype),     # prepared f1 (hoisted prep)
                pltpu.VMEM((bq_row, 1), jnp.float32),  # running max
                pltpu.VMEM((bq_row, 1), jnp.float32),  # running sum of exp
                pltpu.VMEM((bq_row, 1), jnp.float32),  # positive-pair logit
            ],
        ),
        compiler_params=pltpu.CompilerParams(
            dimension_semantics=("parallel", "arbitrary"),
            vmem_limit_bytes=int(min(max(usable, 32 << 20), cap)),
        ),
    )(features1, features2)

    # Per-row losses -> mean over the true rows (F.cross_entropy default).
    return jnp.mean(out[:b])


def _reference_infonce(f1, f2, temperature=0.1):
    # Pure-JAX reference for sanity check.
    f1 = f1 / jnp.maximum(jnp.linalg.norm(f1, axis=1, keepdims=True), 1e-12)
    f2 = f2 / jnp.maximum(jnp.linalg.norm(f2, axis=1, keepdims=True), 1e-12)
    sim = (f1 @ f2.T) / temperature
    b = f1.shape[0]
    logp = jax.nn.log_softmax(sim, axis=1)
    return -jnp.mean(logp[jnp.arange(b), jnp.arange(b)])


if __name__ == "__main__":
    key = jax.random.PRNGKey(0)
    k1, k2, k3, k4, k5, k6 = jax.random.split(key, 6)

    # Small single-block case (module-implied shape): batch=8, feature_dim=32.
    f1_small = jax.random.normal(k1, (8, 32), dtype=jnp.float32)
    f2_small = jax.random.normal(k2, (8, 32), dtype=jnp.float32)

    loss_f32 = jax.block_until_ready(
        infonce_loss(f1_small, f2_small, 0.1, matmul_in_bf16=False))
    ref_small = _reference_infonce(f1_small, f2_small, 0.1)
    assert jnp.allclose(loss_f32, ref_small, atol=1e-4, rtol=1e-4), (loss_f32, ref_small)

    # Default path (bf16 streamed inputs, f32 accumulation) -- looser tolerance.
    loss_bf16 = jax.block_until_ready(infonce_loss(f1_small, f2_small, 0.1))
    assert jnp.allclose(loss_bf16, ref_small, atol=1e-1, rtol=5e-2), (loss_bf16, ref_small)

    # Multi-block tiled case (exercises row/col tiling, online accumulation and
    # the decoupled diagonal-overlap logic), f32 matmul for a tight check.
    f1_big = jax.random.normal(k3, (512, 64), dtype=jnp.float32)
    f2_big = jax.random.normal(k4, (512, 64), dtype=jnp.float32)
    loss_big = jax.block_until_ready(
        infonce_loss(f1_big, f2_big, 0.1, matmul_in_bf16=False))
    ref_big = _reference_infonce(f1_big, f2_big, 0.1)
    assert jnp.allclose(loss_big, ref_big, atol=1e-4, rtol=1e-4), (loss_big, ref_big)

    # Low temperature -> exercises the guarded online-max path.
    loss_cold = jax.block_until_ready(
        infonce_loss(f1_big, f2_big, 0.01, matmul_in_bf16=False))
    ref_cold = _reference_infonce(f1_big, f2_big, 0.01)
    assert jnp.allclose(loss_cold, ref_cold, atol=1e-4, rtol=1e-4), (loss_cold, ref_cold)

    # Irregular batch size -> exercises pad-and-mask tiling and the dynamic
    # diagonal offsets across multiple column blocks.
    f1_odd = jax.random.normal(k5, (300, 48), dtype=jnp.float32)
    f2_odd = jax.random.normal(k6, (300, 48), dtype=jnp.float32)
    loss_odd = jax.block_until_ready(
        infonce_loss(f1_odd, f2_odd, 0.1, matmul_in_bf16=False))
    ref_odd = _reference_infonce(f1_odd, f2_odd, 0.1)
    assert jnp.allclose(loss_odd, ref_odd, atol=1e-4, rtol=1e-4), (loss_odd, ref_odd)

    print("KERNEL_OK")
</pallas_src>

<mosaic_0001>
module attributes {stable_mosaic.version = 11 : i64} {
  func.func @_infonce_kernel(%arg0: i32, %arg1: i32, %arg2: memref<8x32xf32, #tpu.memory_space<vmem>>, %arg3: memref<8x32xf32, #tpu.memory_space<vmem>>, %arg4: memref<8x1xf32, #tpu.memory_space<vmem>>, %arg5: memref<8x32xf32, #tpu.memory_space<vmem>>, %arg6: memref<8x1xf32, #tpu.memory_space<vmem>>, %arg7: memref<8x1xf32, #tpu.memory_space<vmem>>, %arg8: memref<8x1xf32, #tpu.memory_space<vmem>>) attributes {dimension_semantics = [#tpu.dimension_semantics<parallel>, #tpu.dimension_semantics<arbitrary>], iteration_bounds = array<i64: 1, 1>, scalar_prefetch = 0 : i64, scratch_operands = 4 : i64, tpu.core_type = #tpu.core_type<tc>, window_params = [{transform_indices = @transform_0, window_bounds = array<i64: 8, 32>}, {transform_indices = @transform_1, window_bounds = array<i64: 8, 32>}, {transform_indices = @transform_2, window_bounds = array<i64: 8, 1>}]} {
    %c0_i32 = arith.constant 0 : i32
    %0 = arith.cmpi eq, %arg1, %c0_i32 : i32
    %1 = arith.extui %0 : i1 to i32
    %c0_i32_0 = arith.constant 0 : i32
    %2 = arith.cmpi ne, %1, %c0_i32_0 : i32
    scf.if %2 {
      %c0_18 = arith.constant 0 : index
      %c0_19 = arith.constant 0 : index
      %34 = vector.load %arg2[%c0_18, %c0_19] : memref<8x32xf32, #tpu.memory_space<vmem>>, vector<8x32xf32>
      %35 = arith.mulf %34, %34 : vector<8x32xf32>
      %cst_20 = arith.constant dense<0.000000e+00> : vector<8xf32>
      %36 = vector.multi_reduction <add>, %35, %cst_20 [1] : vector<8x32xf32> to vector<8xf32>
      %37 = vector.shape_cast %36 : vector<8xf32> to vector<8x1xf32>
      %cst_21 = arith.constant 1.000000e-24 : f32
      %38 = vector.broadcast %cst_21 : f32 to vector<8x1xf32>
      %39 = arith.maximumf %37, %38 : vector<8x1xf32>
      %40 = math.rsqrt %39 : vector<8x1xf32>
      %cst_22 = arith.constant 1.000000e+01 : f32
      %41 = vector.broadcast %cst_22 : f32 to vector<8x1xf32>
      %42 = arith.mulf %40, %41 : vector<8x1xf32>
      %43 = vector.broadcast %42 : vector<8x1xf32> to vector<8x32xf32>
      %44 = arith.mulf %34, %43 : vector<8x32xf32>
      %c0_23 = arith.constant 0 : index
      %c0_24 = arith.constant 0 : index
      %45 = vector.load %arg5[%c0_23, %c0_24] : memref<8x32xf32, #tpu.memory_space<vmem>>, vector<8x32xf32>
      tpu.vector_store %arg5[%c0_23, %c0_24], %44 {strides = array<i32>} : memref<8x32xf32, #tpu.memory_space<vmem>>, vector<8x32xf32>,
      %cst_25 = arith.constant 0.000000e+00 : f32
      %46 = vector.broadcast %cst_25 : f32 to vector<8x1xf32>
      %c0_26 = arith.constant 0 : index
      %c0_27 = arith.constant 0 : index
      %47 = vector.load %arg7[%c0_26, %c0_27] : memref<8x1xf32, #tpu.memory_space<vmem>>, vector<8x1xf32>
      tpu.vector_store %arg7[%c0_26, %c0_27], %46 {strides = array<i32>} : memref<8x1xf32, #tpu.memory_space<vmem>>, vector<8x1xf32>,
      %cst_28 = arith.constant 0.000000e+00 : f32
      %48 = vector.broadcast %cst_28 : f32 to vector<8x1xf32>
      %c0_29 = arith.constant 0 : index
      %c0_30 = arith.constant 0 : index
      %49 = vector.load %arg8[%c0_29, %c0_30] : memref<8x1xf32, #tpu.memory_space<vmem>>, vector<8x1xf32>
      tpu.vector_store %arg8[%c0_29, %c0_30], %48 {strides = array<i32>} : memref<8x1xf32, #tpu.memory_space<vmem>>, vector<8x1xf32>,
    } else {
    }
    %c0 = arith.constant 0 : index
    %c0_1 = arith.constant 0 : index
    %3 = vector.load %arg3[%c0, %c0_1] : memref<8x32xf32, #tpu.memory_space<vmem>>, vector<8x32xf32>
    %4 = arith.mulf %3, %3 : vector<8x32xf32>
    %cst = arith.constant dense<0.000000e+00> : vector<8xf32>
    %5 = vector.multi_reduction <add>, %4, %cst [1] : vector<8x32xf32> to vector<8xf32>
    %6 = vector.shape_cast %5 : vector<8xf32> to vector<8x1xf32>
    %cst_2 = arith.constant 1.000000e-24 : f32
    %7 = vector.broadcast %cst_2 : f32 to vector<8x1xf32>
    %8 = arith.maximumf %6, %7 : vector<8x1xf32>
    %9 = math.rsqrt %8 : vector<8x1xf32>
    %10 = vector.broadcast %9 : vector<8x1xf32> to vector<8x32xf32>
    %11 = arith.mulf %3, %10 : vector<8x32xf32>
    %c0_3 = arith.constant 0 : index
    %c0_4 = arith.constant 0 : index
    %12 = vector.load %arg5[%c0_3, %c0_4] : memref<8x32xf32, #tpu.memory_space<vmem>>, vector<8x32xf32>
    %cst_5 = arith.constant dense<0.000000e+00> : vector<8x8xf32>
    %13 = tpu.matmul %12, %11, %cst_5 {dimension_numbers = #tpu.dot_dimension_numbers<[1], [1], [0], [0], [0, 0, 1, 0], [], []>} : vector<8x32xf32>, vector<8x32xf32>, vector<8x8xf32> -> vector<8x8xf32>
    %c0_6 = arith.constant 0 : index
    %c0_7 = arith.constant 0 : index
    %14 = vector.load %arg7[%c0_6, %c0_7] : memref<8x1xf32, #tpu.memory_space<vmem>>, vector<8x1xf32>
    %cst_8 = arith.constant 1.000000e+01 : f32
    %15 = vector.broadcast %cst_8 : f32 to vector<8x8xf32>
    %16 = arith.subf %13, %15 : vector<8x8xf32>
    %17 = math.exp %16 : vector<8x8xf32>
    %cst_9 = arith.constant dense<0.000000e+00> : vector<8xf32>
    %18 = vector.multi_reduction <add>, %17, %cst_9 [1] : vector<8x8xf32> to vector<8xf32>
    %19 = vector.shape_cast %18 : vector<8xf32> to vector<8x1xf32>
    %20 = arith.addf %14, %19 : vector<8x1xf32>
    %c0_10 = arith.constant 0 : index
    %c0_11 = arith.constant 0 : index
    %21 = vector.load %arg7[%c0_10, %c0_11] : memref<8x1xf32, #tpu.memory_space<vmem>>, vector<8x1xf32>
    tpu.vector_store %arg7[%c0_10, %c0_11], %20 {strides = array<i32>} : memref<8x1xf32, #tpu.memory_space<vmem>>, vector<8x1xf32>,
    %c8_i32 = arith.constant 8 : i32
    %22 = arith.muli %arg0, %c8_i32 : i32
    %c8_i32_12 = arith.constant 8 : i32
    %23 = arith.muli %arg1, %c8_i32_12 : i32
    %24 = arith.maxsi %22, %23 : i32
    %c8_i32_13 = arith.constant 8 : i32
    %25 = arith.addi %22, %c8_i32_13 : i32
    %c8_i32_14 = arith.constant 8 : i32
    %26 = arith.addi %23, %c8_i32_14 : i32
    %27 = arith.minsi %25, %26 : i32
    %28 = arith.cmpi slt, %24, %27 : i32
    %29 = arith.extui %28 : i1 to i32
    %c0_i32_15 = arith.constant 0 : i32
    %30 = arith.cmpi ne, %29, %c0_i32_15 : i32
    scf.if %30 {
      %34 = arith.subi %24, %22 : i32
      %35 = arith.subi %24, %23 : i32
      %36 = arith.index_cast %34 : i32 to index
      %c0_18 = arith.constant 0 : index
      %37 = vector.load %arg2[%36, %c0_18] : memref<8x32xf32, #tpu.memory_space<vmem>>, vector<8x32xf32>
      %38 = arith.index_cast %35 : i32 to index
      %c0_19 = arith.constant 0 : index
      %39 = vector.load %arg3[%38, %c0_19] : memref<8x32xf32, #tpu.memory_space<vmem>>, vector<8x32xf32>
      %40 = arith.mulf %37, %37 : vector<8x32xf32>
      %cst_20 = arith.constant dense<0.000000e+00> : vector<8xf32>
      %41 = vector.multi_reduction <add>, %40, %cst_20 [1] : vector<8x32xf32> to vector<8xf32>
      %42 = vector.shape_cast %41 : vector<8xf32> to vector<8x1xf32>
      %cst_21 = arith.constant 1.000000e-24 : f32
      %43 = vector.broadcast %cst_21 : f32 to vector<8x1xf32>
      %44 = arith.maximumf %42, %43 : vector<8x1xf32>
      %45 = math.rsqrt %44 : vector<8x1xf32>
      %46 = arith.mulf %39, %39 : vector<8x32xf32>
      %cst_22 = arith.constant dense<0.000000e+00> : vector<8xf32>
      %47 = vector.multi_reduction <add>, %46, %cst_22 [1] : vector<8x32xf32> to vector<8xf32>
      %48 = vector.shape_cast %47 : vector<8xf32> to vector<8x1xf32>
      %cst_23 = arith.constant 1.000000e-24 : f32
      %49 = vector.broadcast %cst_23 : f32 to vector<8x1xf32>
      %50 = arith.maximumf %48, %49 : vector<8x1xf32>
      %51 = math.rsqrt %50 : vector<8x1xf32>
      %52 = arith.mulf %37, %39 : vector<8x32xf32>
      %cst_24 = arith.constant dense<0.000000e+00> : vector<8xf32>
      %53 = vector.multi_reduction <add>, %52, %cst_24 [1] : vector<8x32xf32> to vector<8xf32>
      %54 = vector.shape_cast %53 : vector<8xf32> to vector<8x1xf32>
      %55 = arith.mulf %45, %51 : vector<8x1xf32>
      %cst_25 = arith.constant 1.000000e+01 : f32
      %56 = vector.broadcast %cst_25 : f32 to vector<8x1xf32>
      %57 = arith.mulf %55, %56 : vector<8x1xf32>
      %58 = arith.mulf %54, %57 : vector<8x1xf32>
      %59 = arith.index_cast %34 : i32 to index
      %c0_26 = arith.constant 0 : index
      %60 = vector.load %arg8[%59, %c0_26] : memref<8x1xf32, #tpu.memory_space<vmem>>, vector<8x1xf32>
      tpu.vector_store %arg8[%59, %c0_26], %58 {strides = array<i32>} : memref<8x1xf32, #tpu.memory_space<vmem>>, vector<8x1xf32>,
    } else {
    }
    %c0_i32_16 = arith.constant 0 : i32
    %31 = arith.cmpi eq, %arg1, %c0_i32_16 : i32
    %32 = arith.extui %31 : i1 to i32
    %c0_i32_17 = arith.constant 0 : i32
    %33 = arith.cmpi ne, %32, %c0_i32_17 : i32
    scf.if %33 {
      %c0_18 = arith.constant 0 : index
      %c0_19 = arith.constant 0 : index
      %34 = vector.load %arg7[%c0_18, %c0_19] : memref<8x1xf32, #tpu.memory_space<vmem>>, vector<8x1xf32>
      %35 = math.log %34 : vector<8x1xf32>
      %cst_20 = arith.constant 1.000000e+01 : f32
      %36 = vector.broadcast %cst_20 : f32 to vector<8x1xf32>
      %37 = arith.addf %36, %35 : vector<8x1xf32>
      %c0_21 = arith.constant 0 : index
      %c0_22 = arith.constant 0 : index
      %38 = vector.load %arg8[%c0_21, %c0_22] : memref<8x1xf32, #tpu.memory_space<vmem>>, vector<8x1xf32>
      %39 = arith.subf %37, %38 : vector<8x1xf32>
      %c0_23 = arith.constant 0 : index
      %c0_24 = arith.constant 0 : index
      %40 = vector.load %arg4[%c0_23, %c0_24] : memref<8x1xf32, #tpu.memory_space<vmem>>, vector<8x1xf32>
      tpu.vector_store %arg4[%c0_23, %c0_24], %39 {strides = array<i32>} : memref<8x1xf32, #tpu.memory_space<vmem>>, vector<8x1xf32>,
    } else {
    }
    return
  }
  func.func @transform_0(%arg0: i32, %arg1: i32) -> (i32, i32) {
    %c0_i32 = arith.constant 0 : i32
    %c0_i32_0 = arith.constant 0 : i32
    return %arg0, %c0_i32 : i32, i32
  }
  func.func @transform_1(%arg0: i32, %arg1: i32) -> (i32, i32) {
    %c0_i32 = arith.constant 0 : i32
    %c0_i32_0 = arith.constant 0 : i32
    return %arg1, %c0_i32 : i32, i32
  }
  func.func @transform_2(%arg0: i32, %arg1: i32) -> (i32, i32) {
    %c0_i32 = arith.constant 0 : i32
    %c0_i32_0 = arith.constant 0 : i32
    return %arg0, %c0_i32 : i32, i32
  }
}

</mosaic_0001>

<bundles_post_ra>
// kernel: tpu_custom_call.1
= control target key start
LH: loop header
LB: loop body
LE: loop exit
PB: predicated region body
PF: predicated region fallthrough
CT: control target
= control target key end

     0   :  { %7 = vsyncpa [#allocation7], 0  ;;  %s339_s0 = inlined_call_operand.hbm [shape: f32[8,32], index: 0, kind: input, shape index: {}]   ;;  %s340_s1 = inlined_call_operand.hbm [shape: f32[8,32], index: 1, kind: input, shape index: {}]   ;;  %s341_s2 = inlined_call_operand.vmem [shape: f32[8,1], index: 2, kind: output, shape index: {}]  }
   0x1   :  { %8 = vsyncpa [#allocation9], 0  ;;  %s282_s9 = smov [#allocation6]   ;;  %s283_s11 = smov [#allocation8]  }
   0x2   :  { %s15_s10 = sshll.u32 %s282_s9, 4  ;;  %s25_s12 = sshll.u32 %s283_s11, 4  ;;  %s16_s10 = int_to_ptr.vmem [resolvable:$true] %s15_s10  ;;  %s26_s12 = int_to_ptr.vmem [resolvable:$true] %s25_s12 }
   0x3   :  { %s234_s15 = scalar_lea.hbm %s339_s0, 128 }
   0x4   :  { %p235_p0 = scmp.ne.s32.totalorder %s339_s0, %s234_s15  ;;  %p238_p1 = scmp.lt.u32.totalorder %s234_s15, %s339_s0 }
   0x6   :  { %p240_p2 = pnand %p238_p1, %p235_p0 }
   0x8   :  { %243 = shalt.err (!%p240_p2)
}
   0x9   :  { %s244_s20 = scalar_lea.vmem %s16_s10, 128  ;;  %p249_p4 = scmp.lt.s32.totalorder %s16_s10, %s16_s10 }
   0xa   :  { %p245_p3 = scmp.ne.s32.totalorder %s16_s10, %s244_s20  ;;  %p250_p5 = scmp.lt.s32.totalorder %s244_s20, %s244_s20 }
   0xc   :  { %p251_p6 = por %p250_p5, %p249_p4 }
   0xe   :  { %p252_p7 = pnand %p251_p6, %p245_p3 }
  0x10   :  { %255 = shalt.err (!%p252_p7)
}
  0x11   :  { %18 = dma.hbm_to_vmem [thread:$0]  %s339_s0, 128, %s16_s10, [#allocation7]  }
  0x12   :  { %s256_s25 = scalar_lea.hbm %s340_s1, 128 }
  0x13   :  { %p257_p8 = scmp.ne.s32.totalorder %s340_s1, %s256_s25  ;;  %p260_p9 = scmp.lt.u32.totalorder %s256_s25, %s340_s1 }
  0x15   :  { %p262_p10 = pnand %p260_p9, %p257_p8 }
  0x17   :  { %265 = shalt.err (!%p262_p10)
}
  0x18   :  { %s266_s30 = scalar_lea.vmem %s26_s12, 128  ;;  %p271_p12 = scmp.lt.s32.totalorder %s26_s12, %s26_s12 }
  0x19   :  { %p267_p11 = scmp.ne.s32.totalorder %s26_s12, %s266_s30  ;;  %p272_p13 = scmp.lt.s32.totalorder %s266_s30, %s266_s30 }
  0x1b   :  { %p273_p0 = por %p272_p13, %p271_p12 }
  0x1d   :  { %p274_p1 = pnand %p273_p0, %p267_p11 }
  0x1f   :  { %277 = shalt.err (!%p274_p1)
}
  0x20   :  { %28 = dma.hbm_to_vmem [thread:$0]  %s340_s1, 128, %s26_s12, [#allocation9]  }
  0x21   :  { %278 = dma.done.wait [#allocation7], 128  }
  0x22   :  { %279 = vsyncadd [#allocation7], 4294967168 }
  0x23   :  { %280 = dma.done.wait [#allocation9], 128  }
  0x24   :  { %281 = vsyncadd [#allocation9], 4294967168  ;;  %v39_v0 = vld [vmem:[#allocation6] sm:$0xff]  ;;  %vm41_vm0 = vcmask 261120   ;;  %v53_v1 = vld [vmem:[#allocation8] sm:$0xff]  ;;  %vm50_vm1 = vcmask 7168  }
  0x25   :  { %v40_v2 = vmul.f32 %v39_v0, %v39_v0  ;;  %v54_v3 = vmul.f32 %v53_v1, %v53_v1  ;;  %v284_v6 = vmov 0.0   ;;  %vm285_vm2 = vmmov 0  }
  0x26   :  { %51 = vst.msk [vmem:[#allocation4] sm:$0xff] %vm50_vm1, %v284_v6  ;;  %52 = vst.msk [vmem:[#allocation5] sm:$0xff] %vm50_vm1, %v284_v6  ;;  %213 = vmatprep.subr.mxu0 %v284_v6  ;;  %215 = vmatprep.mubr.msk.f32.mxu0 %vm285_vm2, %v284_v6  ;;  %v180_v17 = vmul.f32 %v53_v1, %v39_v0  ;;  %vm143_vm3 = vcmask 64512  }
  0x27   :  { %v42_v4 = vsel %vm41_vm0, %v40_v2, 0.0  ;;  %v56_v5 = vsel %vm41_vm0, %v54_v3, 0.0 }
  0x28   :  { %43 = vadd.xlane.f32.xlu0 %v42_v4  ;;  %170 = vadd.xlane.f32.xlu1 %v42_v4  ;;  %v181_v18 = vsel %vm41_vm0, %v180_v17, 0.0 }
  0x2c   :  { %57 = vadd.xlane.f32.xlu0 %v56_v5  ;;  %176 = vadd.xlane.f32.xlu1 %v56_v5 }
  0x2d   :  { %v139_v35 = vld [vmem:[#allocation4] sm:$0xff] }
  0x30   :  { %182 = vadd.xlane.f32.xlu1 %v181_v18 }
  0xb5   :  { %v44_v7 = vpop.xlane.xlu0 %43  ;;  %v171_v23 = vpop.xlane.xlu1 %170 }
  0xb6   :  { %v45_v8 = vmax.f32 %v44_v7, 1e-24  ;;  %v172_v27 = vmax.f32 %v171_v23, 1e-24 }
  0xb8   :  { %222 = vrsqrt.f32 %v45_v8 }
  0xb9   :  { %v58_v9 = vpop.xlane.xlu0 %57  ;;  %v177_v26 = vpop.xlane.xlu1 %176 }
  0xba   :  { %v59_v10 = vmax.f32 %v58_v9, 1e-24  ;;  %v178_v28 = vmax.f32 %v177_v26, 1e-24 }
  0xbc   :  { %224 = vrsqrt.f32 %v59_v10 }
  0xbd   :  { %v183_v33 = vpop.xlane.xlu1 %182 }
  0xc2   :  { %v223_v11 = vpop.eup %222 }
  0xc3   :  { %v47_v12 = vmul.f32 10.0, %v223_v11 }
  0xc5   :  { %v48_v13 = vmul.f32 %v47_v12, %v39_v0 }
  0xc6   :  { %v225_v14 = vpop.eup %224 }
  0xc7   :  { %49 = vst.msk [vmem:[#allocation2] sm:$0xff] %vm41_vm0, %v48_v13  ;;  %v61_v15 = vmul.f32 %v225_v14, %v53_v1 }
  0xc9   :  { %214 = vmatpush3.xpose.msk.msra.mxu0 %vm41_vm0, %v61_v15 }
  0xce   :  { %v62_v16 = vld [vmem:[#allocation2] sm:$0xff] }
  0xcf   :  { %216 = vmatmul.mubr.msk.f32.vlgmr.msra.gmra.mrb[0].mxu0 %vm41_vm0, %v62_v16 }
 0x1a2   :  { %v135_v19 = vpop.f32.mrb[0].mxu0 }
 0x1a3   :  { %v210_v20 = vadd.f32 -10.0, %v135_v19  ;;  %v217_v21 = vpop.f32.mrb[1].mxu0 }
 0x1a5   :  { %v141_v22 = vmul.f32 1.442695, %v210_v20 }
 0x1a7   :  { %226 = vpow2.f32 %v141_v22 }
 0x1a8   :  { %228 = vrsqrt.f32 %v172_v27 }
 0x1a9   :  { %230 = vrsqrt.f32 %v178_v28 }
 0x1b1   :  { %v227_v24 = vpop.eup %226 }
 0x1b2   :  { %v144_v25 = vsel %vm143_vm3, %v227_v24, 0.0  ;;  %v229_v29 = vpop.eup %228 }
 0x1b3   :  { %145 = vadd.xlane.f32.xlu0 %v144_v25  ;;  %v231_v30 = vpop.eup %230 }
 0x1b4   :  { %v184_v31 = vmul.f32 %v231_v30, %v229_v29 }
 0x1b6   :  { %v185_v32 = vmul.f32 10.0, %v184_v31 }
 0x1b8   :  { %v186_v34 = vmul.f32 %v185_v32, %v183_v33 }
 0x1ba   :  { %188 = vst.msk [vmem:[#allocation5] sm:$0xff] %vm50_vm1, %v186_v34 }
 0x1c1   :  { %v196_v42 = vld [vmem:[#allocation5] sm:$0xff] }
 0x240   :  { %v146_v36 = vpop.xlane.xlu0 %145 }
 0x241   :  { %v147_v37 = vadd.f32 %v146_v36, %v139_v35 }
 0x243   :  { %149 = vst.msk [vmem:[#allocation4] sm:$0xff] %vm50_vm1, %v147_v37 }
 0x24a   :  { %v192_v38 = vld [vmem:[#allocation4] sm:$0xff] }
 0x24b   :  { %232 = vlog2.f32 %v192_v38 }
 0x255   :  { %v233_v39 = vpop.eup %232 }
 0x256   :  { %v194_v40 = vmul.f32 0.6931472, %v233_v39 }
 0x258   :  { %v195_v41 = vadd.f32 10.0, %v194_v40 }
 0x25a   :  { %v197_v43 = vsub.f32 %v195_v41, %v196_v42 }
 0x25c   :  { %198 = vst.msk [vmem:[%s341_s2] sm:$0xff] %vm50_vm1, %v197_v43 }
 0x25d   :  { %203 = vsyncpa [#allocation7], 1 }
 0x25e   :  { %204 = vsyncpa [#allocation9], 1 }

</bundles_post_ra>
